<compile_context>
chip_gen: v7x
topology: tpu7x:2x2x1
jax: 0.10.0
libtpu: 0.0.40
codegen_flags: <defaults>
</compile_context>

<pallas_src>
import functools
import math

import jax
import jax.numpy as jnp
from jax.experimental import pallas as pl
from jax.experimental.pallas import tpu as pltpu

_LANE_WIDTHS = (1024, 512, 256, 128)   # candidate lane-dense slab widths
_BLOCK_ELEMS = 1 << 18                 # ~256K elements per grid step (1 MiB f32)


def _noise_kernel(seed_ref, x_ref, o_ref, *, sigma):
    """o = x + sigma * N(0,1); noise drawn in-kernel (counter hash + Box-Muller)."""
    rows, cols = x_ref.shape
    half = cols // 2

    # Unique per-pair counter across the whole slab (one counter drives a
    # cos/sin pair, i.e. two output elements).
    r_idx = jax.lax.broadcasted_iota(jnp.int32, (rows, half), 0)
    c_idx = jax.lax.broadcasted_iota(jnp.int32, (rows, half), 1)
    ctr = ((pl.program_id(0) * rows + r_idx) * half + c_idx).astype(jnp.uint32)

    seed = seed_ref[0].astype(jnp.uint32)

    def mix(v):  # lowbias32 integer hash (good avalanche on sequential counters)
        v = v ^ (v >> 16)
        v = v * jnp.uint32(0x7FEB352D)
        v = v ^ (v >> 15)
        v = v * jnp.uint32(0x846CA68B)
        v = v ^ (v >> 16)
        return v

    bits = mix(ctr + seed * jnp.uint32(0x9E3779B9))

    # Two 16-bit uniforms from a single 32-bit draw.
    inv16 = jnp.float32(1.0 / 65536.0)
    u1 = ((bits >> 16) + jnp.uint32(1)).astype(jnp.int32).astype(jnp.float32) * inv16  # (0, 1]
    u2 = (bits & jnp.uint32(0xFFFF)).astype(jnp.int32).astype(jnp.float32) * inv16     # [0, 1)

    # Box-Muller, both outputs used.
    r = jnp.sqrt(jnp.float32(-2.0) * jnp.log(u1))
    theta = jnp.float32(2.0 * math.pi) * u2
    z = jnp.concatenate([r * jnp.cos(theta), r * jnp.sin(theta)], axis=1)

    x = x_ref[...].astype(jnp.float32)
    o_ref[...] = (x + jnp.float32(sigma) * z).astype(o_ref.dtype)


def noise_forward(x, *, use_noise, sigma=0.2, seed=0):
    """JAX/Pallas equivalent of Noise.forward; preserves x's shape and dtype."""
    if not use_noise:
        return x  # PyTorch returns x unchanged -- no kernel, no copies.

    orig_shape = x.shape
    n = x.size

    # Lane-dense slab: widest lane extent that divides the element count
    # (no padding needed for typical NCHW activations); otherwise pad
    # minimally up to 128 lanes.
    width = 128
    for cand in _LANE_WIDTHS:
        if n % cand == 0:
            width = cand
            break

    flat = x.reshape(-1)
    pad = (-n) % width
    if pad:
        flat = jnp.pad(flat, (0, pad))
    rows = flat.size // width
    x2d = flat.reshape(rows, width)

    # Big blocks: second-to-last dim is either a multiple of 8 or the full row
    # extent; last dim is a multiple of 128.  Ragged last block (if any) is
    # masked by Pallas.
    block_rows = min(rows, max(8, _BLOCK_ELEMS // width))
    grid = (pl.cdiv(rows, block_rows),)

    spec = pl.BlockSpec((block_rows, width), lambda i, seed_ref: (i, 0))
    seed_arr = jnp.asarray([seed], dtype=jnp.int32)

    y2d = pl.pallas_call(
        functools.partial(_noise_kernel, sigma=float(sigma)),
        out_shape=jax.ShapeDtypeStruct((rows, width), x.dtype),
        grid_spec=pltpu.PrefetchScalarGridSpec(
            num_scalar_prefetch=1,
            grid=grid,
            in_specs=[spec],
            out_specs=spec,
        ),
        compiler_params=pltpu.CompilerParams(
            # parallel -> v7x megacore shards the loop; harmless on v5e/v6e.
            dimension_semantics=("parallel",),
        ),
    )(seed_arr, x2d)

    if pad:
        return y2d.reshape(-1)[:n].reshape(orig_shape)
    return y2d.reshape(orig_shape)


if __name__ == "__main__":
    key = jax.random.PRNGKey(0)
    # NCHW input, small shapes.
    x = jax.random.normal(key, (2, 4, 16, 16), dtype=jnp.float32)
    sigma = 0.2

    # use_noise=True path.
    y = noise_forward(x, use_noise=True, sigma=sigma, seed=42)
    y = jax.block_until_ready(y)
    assert y.shape == x.shape and y.dtype == x.dtype

    # Sanity: added noise should have roughly std == sigma and mean ~ 0.
    diff = (y - x).reshape(-1)
    d_mean = float(jnp.mean(diff))
    d_std = float(jnp.std(diff))
    assert abs(d_mean) < 0.05, f"noise mean too large: {d_mean}"
    assert abs(d_std - sigma) < 0.05, f"noise std off: {d_std} vs {sigma}"

    # use_noise=False path: must be exactly x (returned directly).
    y0 = noise_forward(x, use_noise=False, sigma=sigma)
    y0 = jax.block_until_ready(y0)
    assert bool(jnp.all(y0 == x))

    print("KERNEL_OK")
</pallas_src>

<mosaic_0001>
module attributes {stable_mosaic.version = 11 : i64} {
  func.func @_noise_kernel(%arg0: i32, %arg1: memref<1xi32, #tpu.memory_space<smem>>, %arg2: memref<2x1024xf32, #tpu.memory_space<vmem>>, %arg3: memref<2x1024xf32, #tpu.memory_space<vmem>>) attributes {dimension_semantics = [#tpu.dimension_semantics<parallel>], iteration_bounds = array<i64: 1>, scalar_prefetch = 1 : i64, scratch_operands = 0 : i64, tpu.core_type = #tpu.core_type<tc>, window_params = [{transform_indices = @transform_0, window_bounds = array<i64: 2, 1024>}, {transform_indices = @transform_1, window_bounds = array<i64: 2, 1024>}]} {
    %0 = tpu.iota {dimensions = array<i32: 0>} : vector<2x512xi32>
    %1 = tpu.iota {dimensions = array<i32: 1>} : vector<2x512xi32>
    %c2_i32 = arith.constant 2 : i32
    %2 = arith.muli %arg0, %c2_i32 : i32
    %3 = vector.broadcast %2 : i32 to vector<2x512xi32>
    %4 = arith.addi %3, %0 : vector<2x512xi32>
    %c512_i32 = arith.constant 512 : i32
    %5 = vector.broadcast %c512_i32 : i32 to vector<2x512xi32>
    %6 = arith.muli %4, %5 : vector<2x512xi32>
    %7 = arith.addi %6, %1 : vector<2x512xi32>
    %c0 = arith.constant 0 : index
    %8 = memref.load %arg1[%c0] : memref<1xi32, #tpu.memory_space<smem>>
    %c-1640531527_i32 = arith.constant -1640531527 : i32
    %9 = arith.muli %8, %c-1640531527_i32 : i32
    %10 = vector.broadcast %9 : i32 to vector<2x512xi32>
    %11 = arith.addi %7, %10 : vector<2x512xi32>
    %c16_i32 = arith.constant 16 : i32
    %12 = vector.broadcast %c16_i32 : i32 to vector<2x512xi32>
    %13 = arith.shrui %11, %12 : vector<2x512xi32>
    %14 = arith.xori %11, %13 : vector<2x512xi32>
    %c2146121005_i32 = arith.constant 2146121005 : i32
    %15 = vector.broadcast %c2146121005_i32 : i32 to vector<2x512xi32>
    %16 = arith.muli %14, %15 : vector<2x512xi32>
    %c15_i32 = arith.constant 15 : i32
    %17 = vector.broadcast %c15_i32 : i32 to vector<2x512xi32>
    %18 = arith.shrui %16, %17 : vector<2x512xi32>
    %19 = arith.xori %16, %18 : vector<2x512xi32>
    %c-2073254261_i32 = arith.constant -2073254261 : i32
    %20 = vector.broadcast %c-2073254261_i32 : i32 to vector<2x512xi32>
    %21 = arith.muli %19, %20 : vector<2x512xi32>
    %c16_i32_0 = arith.constant 16 : i32
    %22 = vector.broadcast %c16_i32_0 : i32 to vector<2x512xi32>
    %23 = arith.shrui %21, %22 : vector<2x512xi32>
    %24 = arith.xori %21, %23 : vector<2x512xi32>
    %c16_i32_1 = arith.constant 16 : i32
    %25 = vector.broadcast %c16_i32_1 : i32 to vector<2x512xi32>
    %26 = arith.shrui %24, %25 : vector<2x512xi32>
    %c1_i32 = arith.constant 1 : i32
    %27 = vector.broadcast %c1_i32 : i32 to vector<2x512xi32>
    %28 = arith.addi %26, %27 : vector<2x512xi32>
    %29 = arith.sitofp %28 : vector<2x512xi32> to vector<2x512xf32>
    %cst = arith.constant 1.52587891E-5 : f32
    %30 = vector.broadcast %cst : f32 to vector<2x512xf32>
    %31 = arith.mulf %29, %30 : vector<2x512xf32>
    %c65535_i32 = arith.constant 65535 : i32
    %32 = vector.broadcast %c65535_i32 : i32 to vector<2x512xi32>
    %33 = arith.andi %24, %32 : vector<2x512xi32>
    %34 = arith.sitofp %33 : vector<2x512xi32> to vector<2x512xf32>
    %cst_2 = arith.constant 1.52587891E-5 : f32
    %35 = vector.broadcast %cst_2 : f32 to vector<2x512xf32>
    %36 = arith.mulf %34, %35 : vector<2x512xf32>
    %37 = math.log %31 : vector<2x512xf32>
    %cst_3 = arith.constant -2.000000e+00 : f32
    %38 = vector.broadcast %cst_3 : f32 to vector<2x512xf32>
    %39 = arith.mulf %38, %37 : vector<2x512xf32>
    %40 = math.sqrt %39 : vector<2x512xf32>
    %cst_4 = arith.constant 6.28318548 : f32
    %41 = vector.broadcast %cst_4 : f32 to vector<2x512xf32>
    %42 = arith.mulf %41, %36 : vector<2x512xf32>
    %43 = math.cos %42 : vector<2x512xf32>
    %44 = arith.mulf %40, %43 : vector<2x512xf32>
    %45 = math.sin %42 : vector<2x512xf32>
    %46 = arith.mulf %40, %45 : vector<2x512xf32>
    %47 = tpu.concatenate %44, %46 in 1 : vector<2x512xf32>, vector<2x512xf32> -> vector<2x1024xf32>
    %c0_5 = arith.constant 0 : index
    %c0_6 = arith.constant 0 : index
    %48 = vector.load %arg2[%c0_5, %c0_6] : memref<2x1024xf32, #tpu.memory_space<vmem>>, vector<2x1024xf32>
    %cst_7 = arith.constant 2.000000e-01 : f32
    %49 = vector.broadcast %cst_7 : f32 to vector<2x1024xf32>
    %50 = arith.mulf %49, %47 : vector<2x1024xf32>
    %51 = arith.addf %48, %50 : vector<2x1024xf32>
    %c0_8 = arith.constant 0 : index
    %c0_9 = arith.constant 0 : index
    %52 = vector.load %arg3[%c0_8, %c0_9] : memref<2x1024xf32, #tpu.memory_space<vmem>>, vector<2x1024xf32>
    tpu.vector_store %arg3[%c0_8, %c0_9], %51 {strides = array<i32>} : memref<2x1024xf32, #tpu.memory_space<vmem>>, vector<2x1024xf32>,
    return
  }
  func.func @transform_0(%arg0: i32, %arg1: memref<1xi32, #tpu.memory_space<smem>>) -> (i32, i32) {
    %c0_i32 = arith.constant 0 : i32
    %c0_i32_0 = arith.constant 0 : i32
    return %arg0, %c0_i32 : i32, i32
  }
  func.func @transform_1(%arg0: i32, %arg1: memref<1xi32, #tpu.memory_space<smem>>) -> (i32, i32) {
    %c0_i32 = arith.constant 0 : i32
    %c0_i32_0 = arith.constant 0 : i32
    return %arg0, %c0_i32 : i32, i32
  }
}

</mosaic_0001>

<bundles_post_ra>
// kernel: tpu_custom_call.1
= control target key start
LH: loop header
LB: loop body
LE: loop exit
PB: predicated region body
PF: predicated region fallthrough
CT: control target
= control target key end

     0   :  { %8 = vsyncpa [#allocation5], 0  ;;  %s1674_s0 = inlined_call_operand.<no memory space> [shape: s32[1], index: 0, kind: input, shape index: {}]   ;;  %s1675_s1 = inlined_call_operand.hbm [shape: f32[2,1024], index: 1, kind: input, shape index: {}]   ;;  %s1676_s2 = inlined_call_operand.hbm [shape: f32[2,1024], index: 2, kind: output, shape index: {}]  }
   0x1   :  { %9 = vsyncpa [#allocation6], 0  ;;  %s1195_s9 = smov [#allocation4]   ;;  %s1147_s13 = scalar_lea.hbm %s1675_s1, 256 }
   0x2   :  { %s16_s10 = sshll.u32 %s1195_s9, 4  ;;  %p1148_p0 = scmp.ne.s32.totalorder %s1675_s1, %s1147_s13  ;;  %s17_s10 = int_to_ptr.vmem [resolvable:$true] %s16_s10 }
   0x3   :  { %p1151_p1 = scmp.lt.u32.totalorder %s1147_s13, %s1675_s1 }
   0x5   :  { %p1153_p2 = pnand %p1151_p1, %p1148_p0 }
   0x7   :  { %1156 = shalt.err (!%p1153_p2)
}
   0x8   :  { %s1157_s18 = scalar_lea.vmem %s17_s10, 256  ;;  %p1162_p4 = scmp.lt.s32.totalorder %s17_s10, %s17_s10 }
   0x9   :  { %p1158_p3 = scmp.ne.s32.totalorder %s17_s10, %s1157_s18  ;;  %p1163_p5 = scmp.lt.s32.totalorder %s1157_s18, %s1157_s18 }
   0xb   :  { %p1164_p6 = por %p1163_p5, %p1162_p4 }
   0xd   :  { %p1165_p7 = pnand %p1164_p6, %p1158_p3 }
   0xf   :  { %1168 = shalt.err (!%p1165_p7)
}
  0x10   :  { %19 = dma.hbm_to_vmem [thread:$0]  %s1675_s1, 256, %s17_s10, [#allocation5]  }
  0x11   :  { %1191 = dma.done.wait [#allocation5], 256  }
  0x12   :  { %1192 = vsyncadd [#allocation5], 4294967040  ;;  %v23_v0 = vlaneseq  ;;  %s39_s23 = smul.u32 2654435769, %s1674_s0  ;;  %s1203_s0 = smov [#allocation7]  }
  0x13   :  { %s1049_s1 = sshll.u32 %s1203_s0, 4  ;;  %s1050_s1 = int_to_ptr.vmem [resolvable:$true] %s1049_s1 }
  0x14   :  { %v1234_v1 = vshrl.u32 %v23_v0, 7  ;;  %v26_v2 = vand.u32 127, %v23_v0  ;;  %v40_v6 = vstv %s39_s23  ;;  %s1169_s24 = scalar_lea.vmem %s1050_s1, 256  ;;  %p1174_p9 = scmp.lt.s32.totalorder %s1050_s1, %s1050_s1 }
  0x15   :  { %p1170_p8 = scmp.ne.s32.totalorder %s1050_s1, %s1169_s24  ;;  %p1175_p10 = scmp.lt.s32.totalorder %s1169_s24, %s1169_s24 }
  0x16   :  { %v27_v3 = vadd.s32 128, %v26_v2  ;;  %v28_v4 = vadd.s32 256, %v26_v2  ;;  %v33_v5 = vmul.u32 512, %v1234_v1  ;;  %v29_v16 = vadd.s32 384, %v26_v2 }
  0x17   :  { %p1176_p11 = por %p1175_p10, %p1174_p9 }
  0x18   :  { %v34_v7 = vadd.s32 %v33_v5, %v26_v2  ;;  %v35_v8 = vadd.s32 %v33_v5, %v27_v3  ;;  %v36_v9 = vadd.s32 %v33_v5, %v28_v4  ;;  %v37_v22 = vadd.s32 %v33_v5, %v29_v16 }
  0x19   :  { %p1177_p12 = pnand %p1176_p11, %p1170_p8 }
  0x1a   :  { %v41_v10 = vadd.s32 %v40_v6, %v34_v7  ;;  %v42_v11 = vadd.s32 %v40_v6, %v35_v8  ;;  %v43_v12 = vadd.s32 %v40_v6, %v36_v9  ;;  %v44_v29 = vadd.s32 %v40_v6, %v37_v22 }
  0x1b   :  { %v1196_v8 = vmov 683565275  }
  0x1c   :  { %v45_v13 = vshrl.u32 %v41_v10, 16  ;;  %v46_v14 = vshrl.u32 %v42_v11, 16  ;;  %v47_v15 = vshrl.u32 %v43_v12, 16  ;;  %v48_v36 = vshrl.u32 %v44_v29, 16 }
  0x1e   :  { %v49_v17 = vxor.u32 %v45_v13, %v41_v10  ;;  %v50_v18 = vxor.u32 %v46_v14, %v42_v11  ;;  %v51_v19 = vxor.u32 %v47_v15, %v43_v12  ;;  %v52_v42 = vxor.u32 %v48_v36, %v44_v29 }
  0x1f   :  { %v1197_v10 = vmov 2475754826  }
  0x20   :  { %v53_v20 = vmul.u32 2146121005, %v49_v17  ;;  %v54_v21 = vmul.u32 2146121005, %v50_v18  ;;  %v1198_v17 = vmov 2131351028  }
  0x21   :  { %v55_v23 = vmul.u32 2146121005, %v51_v19  ;;  %v56_v47 = vmul.u32 2146121005, %v52_v42  ;;  %v1199_v19 = vmov 2102212464  }
  0x22   :  { %v57_v24 = vshrl.u32 %v53_v20, 15  ;;  %v58_v25 = vshrl.u32 %v54_v21, 15 }
  0x23   :  { %v59_v26 = vshrl.u32 %v55_v23, 15  ;;  %v60_v52 = vshrl.u32 %v56_v47, 15 }
  0x24   :  { %v61_v27 = vxor.u32 %v57_v24, %v53_v20  ;;  %v62_v28 = vxor.u32 %v58_v25, %v54_v21 }
  0x25   :  { %v63_v30 = vxor.u32 %v59_v26, %v55_v23  ;;  %v64_v57 = vxor.u32 %v60_v52, %v56_v47 }
  0x26   :  { %v65_v31 = vmul.u32 2221713035, %v61_v27  ;;  %v66_v32 = vmul.u32 2221713035, %v62_v28  ;;  %v1200_v28 = vmov 920167782  }
  0x27   :  { %v67_v33 = vmul.u32 2221713035, %v63_v30  ;;  %v68_v62 = vmul.u32 2221713035, %v64_v57 }
  0x28   :  { %v69_v34 = vshrl.u32 %v65_v31, 16  ;;  %v70_v35 = vshrl.u32 %v66_v32, 16 }
  0x29   :  { %v71_v39 = vshrl.u32 %v67_v33, 16  ;;  %v72_v6 = vshrl.u32 %v68_v62, 16 }
  0x2a   :  { %v1237_v37 = vxor.u32 %v69_v34, %v65_v31  ;;  %v1239_v38 = vxor.u32 %v70_v35, %v66_v32  ;;  %v1201_v31 = vmov 1326507024  }
  0x2b   :  { %v1243_v44 = vxor.u32 %v71_v39, %v67_v33  ;;  %v1260_v14 = vxor.u32 %v72_v6, %v68_v62 }
  0x2c   :  { %v93_v40 = vand.u32 65535, %v1237_v37  ;;  %v94_v41 = vand.u32 65535, %v1239_v38 }
  0x2d   :  { %v95_v49 = vand.u32 65535, %v1243_v44  ;;  %v96_v52 = vand.u32 65535, %v1260_v14 }
  0x2e   :  { %v97_v43 = vcvt.s32.f32 %v93_v40  ;;  %v98_v45 = vcvt.s32.f32 %v94_v41 }
  0x2f   :  { %v99_v54 = vcvt.s32.f32 %v95_v49 }
  0x30   :  { %v101_v46 = vmul.f32 1.5258789e-05, %v97_v43  ;;  %v102_v50 = vmul.f32 1.5258789e-05, %v98_v45 }
  0x31   :  { %v103_v60 = vmul.f32 1.5258789e-05, %v99_v54 }
  0x32   :  { %v1245_v48 = vmul.f32 6.2831855, %v101_v46  ;;  %v1249_v55 = vmul.f32 6.2831855, %v102_v50 }
  0x33   :  { %v1255_v3 = vmul.f32 6.2831855, %v103_v60 }
  0x34   :  { %v152_v51 = vand.u32 2139095040, %v1245_v48  ;;  %v149_v58 = vand.u32 2147483647, %v1245_v48  ;;  %v255_v61 = vand.u32 2139095040, %v1249_v55  ;;  %v252_v22 = vand.u32 2147483647, %v1249_v55 }
  0x35   :  { %v358_v13 = vand.u32 2139095040, %v1255_v3 }
  0x36   :  { %v153_v53 = vshrl.u32 %v152_v51, 23  ;;  %v156_v0 = vand.u32 8388607, %v149_v58  ;;  %v256_v4 = vshrl.u32 %v255_v61, 23  ;;  %v259_v60 = vand.u32 8388607, %v252_v22 }
  0x37   :  { %v359_v26 = vshrl.u32 %v358_v13, 23 }
  0x38   :  { %v1058_v56 = vadd.s32 4294967169, %v153_v53  ;;  %v157_v7 = vor.u32 8388608, %v156_v0  ;;  %v1062_v12 = vadd.s32 4294967169, %v256_v4 }
  0x39   :  { %v1066_v41 = vadd.s32 4294967169, %v359_v26 }
  0x3a   :  { %v159_v59 = vadd.s32 1, %v1058_v56  ;;  %v1265_v21 = vshll.u32 %v157_v7, 8  ;;  %v262_v25 = vadd.s32 1, %v1062_v12  ;;  %v260_v7 = vor.u32 8388608, %v259_v60 }
  0x3b   :  { %v365_v61 = vadd.s32 1, %v1066_v41 }
  0x3c   :  { %vm160_vm0 = vcmp.gt.s32.totalorder %v159_v59, 0  ;;  %vm263_vm5 = vcmp.gt.s32.totalorder %v262_v25, 0  ;;  %v300_v41 = vshll.u32 %v260_v7, 8 }
  0x3d   :  { %v161_v63 = vsel %vm160_vm0, %v159_v59, 0  ;;  %v264_v56 = vsel %vm263_vm5, %v262_v25, 0  ;;  %vm366_vm7 = vcmp.gt.s32.totalorder %v365_v61, 0 }
  0x3e   :  { %v163_v2 = vand.u32 31, %v161_v63  ;;  %v162_v15 = vshrl.u32 %v161_v63, 5  ;;  %v266_v4 = vand.u32 31, %v264_v56 }
  0x40   :  { %v164_v5 = vsub.s32 32, %v163_v2  ;;  %v166_v9 = vshll.u32 %v1196_v8, %v163_v2  ;;  %v169_v16 = vshll.u32 %v1197_v10, %v163_v2  ;;  %v172_v18 = vshll.u32 %v1198_v17, %v163_v2 }
  0x41   :  { %v175_v20 = vshll.u32 %v1199_v19, %v163_v2  ;;  %v178_v30 = vshll.u32 %v1200_v28, %v163_v2  ;;  %vm181_vm1 = vcmp.lt.s32.totalorder %v162_v15, 1  ;;  %vm183_vm2 = vcmp.lt.s32.totalorder %v162_v15, 3 }
  0x42   :  { %v167_v11 = vshrl.u32 %v1197_v10, %v164_v5  ;;  %v170_v24 = vshrl.u32 %v1198_v17, %v164_v5  ;;  %v173_v27 = vshrl.u32 %v1199_v19, %v164_v5  ;;  %v176_v29 = vshrl.u32 %v1200_v28, %v164_v5 }
  0x43   :  { %v179_v32 = vshrl.u32 %v1201_v31, %v164_v5  ;;  %v165_v33 = vshrl.u32 %v1196_v8, %v164_v5  ;;  %vm184_vm3 = vcmp.lt.s32.totalorder %v162_v15, 4  ;;  %vm182_vm4 = vcmp.lt.s32.totalorder %v162_v15, 2 }
  0x44   :  { %v168_v23 = vor.u32 %v167_v11, %v166_v9  ;;  %v171_v34 = vor.u32 %v170_v24, %v169_v16  ;;  %v174_v35 = vor.u32 %v173_v27, %v172_v18  ;;  %v177_v36 = vor.u32 %v176_v29, %v175_v20 }
  0x45   :  { %v180_v39 = vor.u32 %v179_v32, %v178_v30  ;;  %v265_v2 = vshrl.u32 %v264_v56, 5  ;;  %v100_v5 = vcvt.s32.f32 %v96_v52  ;;  %v267_v11 = vsub.s32 32, %v266_v4 }
  0x46   :  { %v189_v40 = vsel %vm181_vm1, %v168_v23, %v171_v34  ;;  %v186_v42 = vsel %vm184_vm3, %v174_v35, 2102212464  ;;  %v190_v43 = vsel %vm184_vm3, %v177_v36, 920167782  ;;  %v193_v45 = vsel %vm181_vm1, %v171_v34, %v174_v35 }
  0x47   :  { %v194_v46 = vsel %vm184_vm3, %v180_v39, 1326507024  ;;  %v185_v47 = vsel %vm181_vm1, %v165_v33, %v168_v23  ;;  %v187_v49 = vsel %vm183_vm2, %v171_v34, %v186_v42  ;;  %v191_v50 = vsel %vm183_vm2, %v174_v35, %v190_v43 }
  0x48   :  { %v195_v51 = vsel %vm183_vm2, %v177_v36, %v194_v46  ;;  %v192_v53 = vsel %vm182_vm4, %v189_v40, %v191_v50  ;;  %v188_v62 = vsel %vm182_vm4, %v185_v47, %v187_v49  ;;  %v269_v12 = vshll.u32 %v1196_v8, %v266_v4 }
  0x49   :  { %v196_v54 = vsel %vm182_vm4, %v193_v45, %v195_v51  ;;  %v1288_v63 = vmul.u32.u64.low %v1265_v21, %v192_v53  ;;  %v1289_v0 = vmul.u32.u64.high %v1265_v21, %v192_v53, %v1288_v63  ;;  %v204_v6 = vmul.u32 %v1265_v21, %v188_v62 }
  0x4a   :  { %v1281_v57 = vmul.u32.u64.low %v1265_v21, %v196_v54  ;;  %v1282_v59 = vmul.u32.u64.high %v1265_v21, %v196_v54, %v1281_v57  ;;  %vm284_vm8 = vcmp.lt.s32.totalorder %v265_v2, 1  ;;  %v272_v13 = vshll.u32 %v1197_v10, %v266_v4 }
  0x4b   :  { %v207_v9 = vadd.s32 1, %v1289_v0  ;;  %v275_v15 = vshll.u32 %v1198_v17, %v266_v4  ;;  %v278_v16 = vshll.u32 %v1199_v19, %v266_v4  ;;  %v281_v18 = vshll.u32 %v1200_v28, %v266_v4 }
  0x4c   :  { %vm206_vm6 = vc.u32 %v1282_v59, %v1288_v63  ;;  %v268_v21 = vshrl.u32 %v1196_v8, %v267_v11  ;;  %v270_v23 = vshrl.u32 %v1197_v10, %v267_v11  ;;  %v273_v24 = vshrl.u32 %v1198_v17, %v267_v11 }
  0x4d   :  { %v208_v20 = vsel %vm206_vm6, %v207_v9, %v1289_v0  ;;  %v276_v26 = vshrl.u32 %v1199_v19, %v267_v11  ;;  %v279_v27 = vshrl.u32 %v1200_v28, %v267_v11  ;;  %v282_v29 = vshrl.u32 %v1201_v31, %v267_v11 }
  0x4e   :  { %v209_v25 = vadd.s32 %v208_v20, %v204_v6  ;;  %v271_v30 = vor.u32 %v270_v23, %v269_v12  ;;  %v274_v32 = vor.u32 %v273_v24, %v272_v13  ;;  %vm286_vm9 = vcmp.lt.s32.totalorder %v265_v2, 3 }
  0x4f   :  { %vm287_vm10 = vcmp.lt.s32.totalorder %v265_v2, 4  ;;  %v277_v34 = vor.u32 %v276_v26, %v275_v15  ;;  %v280_v35 = vor.u32 %v279_v27, %v278_v16  ;;  %v283_v36 = vor.u32 %v282_v29, %v281_v18 }
  0x50   :  { %v210_v33 = vadd.s32 536870912, %v209_v25  ;;  %vm285_vm11 = vcmp.lt.s32.totalorder %v265_v2, 2  ;;  %v288_v39 = vsel %vm284_vm8, %v268_v21, %v271_v30  ;;  %v292_v40 = vsel %vm284_vm8, %v271_v30, %v274_v32 }
  0x51   :  { %v289_v43 = vsel %vm287_vm10, %v277_v34, 2102212464  ;;  %v293_v45 = vsel %vm287_vm10, %v280_v35, 920167782  ;;  %v367_v46 = vsel %vm366_vm7, %v365_v61, 0  ;;  %v296_v50 = vsel %vm284_vm8, %v274_v32, %v277_v34 }
  0x52   :  { %v1310_v42 = vshrl.u32 %v210_v33, 30  ;;  %v290_v47 = vsel %vm286_vm9, %v274_v32, %v289_v43  ;;  %v294_v49 = vsel %vm286_vm9, %v277_v34, %v293_v45  ;;  %v297_v51 = vsel %vm287_vm10, %v283_v36, 1326507024 }
  0x53   :  { %v104_v52 = vmul.f32 1.5258789e-05, %v100_v5  ;;  %v295_v53 = vsel %vm285_vm11, %v292_v40, %v294_v49  ;;  %v298_v56 = vsel %vm286_vm9, %v280_v35, %v297_v51  ;;  %v291_v61 = vsel %vm285_vm11, %v288_v39, %v290_v47 }
  0x54   :  { %v212_v54 = vshll.u32 %v1310_v42, 30  ;;  %v1322_v57 = vmul.u32.u64.low %v300_v41, %v295_v53  ;;  %v1323_v60 = vmul.u32.u64.high %v300_v41, %v295_v53, %v1322_v57  ;;  %v299_v62 = vsel %vm285_vm11, %v296_v50, %v298_v56 }
  0x55   :  { %v355_v0 = vand.u32 2147483647, %v1255_v3  ;;  %v369_v4 = vand.u32 31, %v367_v46  ;;  %v1329_v6 = vmul.u32.u64.low %v300_v41, %v299_v62  ;;  %v1330_v7 = vmul.u32.u64.high %v300_v41, %v299_v62, %v1329_v6 }
  0x56   :  { %v1332_v9 = vsub.s32 %v209_v25, %v212_v54  ;;  %v307_v11 = vmul.u32 %v300_v41, %v291_v61  ;;  %v310_v12 = vadd.s32 1, %v1323_v60  ;;  %v1335_v13 = vmul.f32 6.2831855, %v104_v52 }
  0x57   :  { %v370_v5 = vsub.s32 32, %v369_v4  ;;  %v362_v15 = vand.u32 8388607, %v355_v0  ;;  %v1339_v16 = vshrl.u32 %v367_v46, 5  ;;  %v372_v2 = vshll.u32 %v1196_v8, %v369_v4 }
  0x58   :  { %vm309_vm12 = vc.u32 %v1330_v7, %v1322_v57  ;;  %v375_v18 = vshll.u32 %v1197_v10, %v369_v4  ;;  %v378_v20 = vshll.u32 %v1198_v17, %v369_v4  ;;  %v381_v21 = vshll.u32 %v1199_v19, %v369_v4 }
  0x59   :  { %v311_v23 = vsel %vm309_vm12, %v310_v12, %v1323_v60  ;;  %v373_v24 = vshrl.u32 %v1197_v10, %v370_v5  ;;  %v376_v25 = vshrl.u32 %v1198_v17, %v370_v5  ;;  %v379_v26 = vshrl.u32 %v1199_v19, %v370_v5 }
  0x5a   :  { %v215_v27 = vsub.s32 0, %v1332_v9  ;;  %v312_v29 = vadd.s32 %v311_v23, %v307_v11  ;;  %v382_v30 = vshrl.u32 %v1200_v28, %v370_v5  ;;  %v384_v32 = vshll.u32 %v1200_v28, %v369_v4 }
  0x5b   :  { %v77_v33 = vshrl.u32 %v1237_v37, 16  ;;  %v363_v34 = vor.u32 8388608, %v362_v15  ;;  %v385_v35 = vshrl.u32 %v1201_v31, %v370_v5  ;;  %vm387_vm13 = vcmp.lt.s32.totalorder %v1339_v16, 1 }
  0x5c   :  { %v313_v36 = vadd.s32 536870912, %v312_v29  ;;  %v383_v39 = vor.u32 %v382_v30, %v381_v21  ;;  %v461_v40 = vand.u32 2139095040, %v1335_v13  ;;  %v374_v41 = vor.u32 %v373_v24, %v372_v2 }
  0x5d   :  { %v377_v43 = vor.u32 %v376_v25, %v375_v18  ;;  %v380_v45 = vor.u32 %v379_v26, %v378_v20  ;;  %vm390_vm14 = vcmp.lt.s32.totalorder %v1339_v16, 4  ;;  %v1059_v46 = vmin.u32 %v215_v27, %v1332_v9 }
  0x5e   :  { %v1360_v47 = vshrl.u32 %v313_v36, 30  ;;  %v386_v49 = vor.u32 %v385_v35, %v384_v32  ;;  %vm389_vm15 = vcmp.lt.s32.totalorder %v1339_v16, 3  ;;  %v78_v37 = vshrl.u32 %v1239_v38, 16 }
  0x5f   :  { %v79_v50 = vshrl.u32 %v1243_v44, 16  ;;  %v81_v51 = vadd.s32 1, %v77_v33  ;;  %v403_v52 = vshll.u32 %v363_v34, 8  ;;  %v371_v54 = vshrl.u32 %v1196_v8, %v370_v5 }
  0x60   :  { %v315_v53 = vshll.u32 %v1360_v47, 30  ;;  %v396_v56 = vsel %vm390_vm14, %v383_v39, 920167782  ;;  %v462_v60 = vshrl.u32 %v461_v40, 23  ;;  %vm388_vm0 = vcmp.lt.s32.totalorder %v1339_v16, 2 }
  0x61   :  { %v395_v61 = vsel %vm387_vm13, %v374_v41, %v377_v43  ;;  %v397_v38 = vsel %vm389_vm15, %v380_v45, %v396_v56  ;;  %v399_v44 = vsel %vm387_vm13, %v377_v43, %v380_v45  ;;  %v217_v62 = vclz %v1059_v46 }
  0x62   :  { %v1376_v4 = vsub.s32 %v312_v29, %v315_v53  ;;  %v392_v6 = vsel %vm390_vm14, %v380_v45, 2102212464  ;;  %v400_v5 = vsel %vm390_vm14, %v386_v49, 1326507024  ;;  %v80_v11 = vshrl.u32 %v1260_v14, 16 }
  0x63   :  { %v82_v12 = vadd.s32 1, %v78_v37  ;;  %v83_v15 = vadd.s32 1, %v79_v50  ;;  %v401_v2 = vsel %vm389_vm15, %v383_v39, %v400_v5  ;;  %v398_v20 = vsel %vm388_vm0, %v395_v61, %v397_v38 }
  0x64   :  { %v318_v18 = vsub.s32 0, %v1376_v4  ;;  %v402_v21 = vsel %vm388_vm0, %v399_v44, %v401_v2  ;;  %v1070_v23 = vadd.s32 4294967169, %v462_v60  ;;  %v391_v24 = vsel %vm387_vm13, %v371_v54, %v374_v41 }
  0x65   :  { %v393_v14 = vsel %vm389_vm15, %v377_v43, %v392_v6  ;;  %v1394_v25 = vmul.u32.u64.low %v403_v52, %v402_v21  ;;  %v1395_v26 = vmul.u32.u64.high %v403_v52, %v402_v21, %v1394_v25  ;;  %v85_v27 = vcvt.s32.f32 %v81_v51 }
  0x66   :  { %v1060_v29 = vadd.s32 4294967294, %v217_v62  ;;  %v1063_v30 = vmin.u32 %v318_v18, %v1376_v4  ;;  %v84_v32 = vadd.s32 1, %v80_v11  ;;  %v86_v35 = vcvt.s32.f32 %v82_v12 }
  0x67   :  { %v1398_v33 = vmul.u32.u64.low %v403_v52, %v398_v20  ;;  %v1399_v34 = vmul.u32.u64.high %v403_v52, %v398_v20, %v1398_v33  ;;  %v394_v39 = vsel %vm388_vm0, %v391_v24, %v393_v14  ;;  %v468_v40 = vadd.s32 1, %v1070_v23 }
  0x68   :  { %v320_v36 = vclz %v1063_v30  ;;  %v87_v41 = vcvt.s32.f32 %v83_v15  ;;  %v89_v43 = vmul.f32 1.5258789e-05, %v85_v27  ;;  %vm1061_vm1 = vcmp.lt.s32.totalorder %v1060_v29, 0 }
  0x69   :  { %vm412_vm2 = vc.u32 %v1395_v26, %v1398_v33  ;;  %vm469_vm3 = vcmp.gt.s32.totalorder %v468_v40, 0  ;;  %v410_v46 = vmul.u32 %v403_v52, %v394_v39  ;;  %v413_v49 = vadd.s32 1, %v1399_v34 }
  0x6a   :  { %v1064_v45 = vadd.s32 4294967294, %v320_v36  ;;  %v470_v37 = vsel %vm469_vm3, %v468_v40, 0  ;;  %v88_v50 = vcvt.s32.f32 %v84_v32  ;;  %v90_v51 = vmul.f32 1.5258789e-05, %v86_v35 }
  0x6b   :  { %v472_v53 = vand.u32 31, %v470_v37  ;;  %v91_v54 = vmul.f32 1.5258789e-05, %v87_v41  ;;  %v220_v56 = vsel %vm1061_vm1, 0, %v1060_v29  ;;  %v414_v16 = vsel %vm412_vm2, %v413_v49, %v1399_v34 }
  0x6c   :  { %1115 = vlog2.f32 %v89_v43  ;;  %vm1065_vm4 = vcmp.lt.s32.totalorder %v1064_v45, 0  ;;  %v415_v60 = vadd.s32 %v414_v16, %v410_v46  ;;  %v92_v38 = vmul.f32 1.5258789e-05, %v88_v50 }
  0x6d   :  { %v473_v61 = vsub.s32 32, %v472_v53  ;;  %1117 = vlog2.f32 %v90_v51  ;;  %v225_v44 = vsub.s32 4294967266, %v220_v56  ;;  %v458_v62 = vand.u32 2147483647, %v1335_v13 }
  0x6e   :  { %1119 = vlog2.f32 %v91_v54  ;;  %v205_v52 = vadd.s32 %v1288_v63, %v1282_v59  ;;  %v308_v6 = vadd.s32 %v1322_v57, %v1330_v7  ;;  %v416_v5 = vadd.s32 536870912, %v415_v60 }
  0x6f   :  { %v221_v11 = vsub.s32 32, %v220_v56  ;;  %v323_v12 = vsel %vm1065_vm4, 0, %v1064_v45  ;;  %v475_v15 = vshll.u32 %v1196_v8, %v472_v53  ;;  %v476_v2 = vshrl.u32 %v1197_v10, %v473_v61 }
  0x70   :  { %v1415_v18 = vshrl.u32 %v416_v5, 30  ;;  %v478_v20 = vshll.u32 %v1197_v10, %v472_v53  ;;  %v479_v21 = vshrl.u32 %v1198_v17, %v473_v61  ;;  %v484_v23 = vshll.u32 %v1199_v19, %v472_v53 }
  0x71   :  { %v226_v24 = vadd.s32 127, %v225_v44  ;;  %v465_v59 = vand.u32 8388607, %v458_v62  ;;  %v471_v63 = vshrl.u32 %v470_v37, 5  ;;  %v485_v57 = vshrl.u32 %v1200_v28, %v473_v61 }
  0x72   :  { %v328_v7 = vsub.s32 4294967266, %v323_v12  ;;  %v418_v14 = vshll.u32 %v1415_v18, 30  ;;  %v481_v25 = vshll.u32 %v1198_v17, %v472_v53  ;;  %v482_v27 = vshrl.u32 %v1199_v19, %v473_v61 }
  0x73   :  { %v222_v10 = vshll.u32 %v1332_v9, %v220_v56  ;;  %v223_v29 = vshrl.u32 %v205_v52, %v221_v11  ;;  %v477_v30 = vor.u32 %v476_v2, %v475_v15  ;;  %v486_v32 = vor.u32 %v485_v57, %v484_v23 }
  0x74   :  { %v1427_v34 = vsub.s32 %v415_v60, %v418_v14  ;;  %v480_v35 = vor.u32 %v479_v21, %v478_v20  ;;  %v487_v36 = vshll.u32 %v1200_v28, %v472_v53  ;;  %v488_v39 = vshrl.u32 %v1201_v31, %v473_v61 }
  0x75   :  { %v324_v40 = vsub.s32 32, %v323_v12  ;;  %v466_v41 = vor.u32 8388608, %v465_v59  ;;  %vm490_vm5 = vcmp.lt.s32.totalorder %v471_v63, 1  ;;  %vm493_vm6 = vcmp.lt.s32.totalorder %v471_v63, 4 }
  0x76   :  { %v1116_v43 = vpop.eup %1115  ;;  %v227_v17 = vshll.u32 %v226_v24, 23  ;;  %v329_v45 = vadd.s32 127, %v328_v7  ;;  %v421_v19 = vsub.s32 0, %v1427_v34  ;;  %v483_v9 = vor.u32 %v482_v27, %v481_v25 }
  0x77   :  { %v1118_v46 = vpop.eup %1117  ;;  %v474_v49 = vshrl.u32 %v1196_v8, %v473_v61  ;;  %vm491_vm7 = vcmp.lt.s32.totalorder %v471_v63, 2  ;;  %vm492_vm8 = vcmp.lt.s32.totalorder %v471_v63, 3  ;;  %v499_v37 = vsel %vm493_vm6, %v486_v32, 920167782 }
  0x78   :  { %v1120_v28 = vpop.eup %1119  ;;  %v1067_v31 = vmin.u32 %v421_v19, %v1427_v34  ;;  %v489_v50 = vor.u32 %v488_v39, %v487_v36  ;;  %v495_v51 = vsel %vm493_vm6, %v483_v9, 2102212464  ;;  %v498_v53 = vsel %vm490_vm5, %v477_v30, %v480_v35 }
  0x79   :  { %1121 = vlog2.f32 %v92_v38  ;;  %v325_v54 = vshll.u32 %v1376_v4, %v323_v12  ;;  %v326_v56 = vshrl.u32 %v308_v6, %v324_v40  ;;  %v506_v16 = vshll.u32 %v466_v41, 8 }
  0x7a   :  { %v224_v60 = vor.u32 %v223_v29, %v222_v10  ;;  %v330_v44 = vshll.u32 %v329_v45, 23  ;;  %v423_v8 = vclz %v1067_v31  ;;  %v500_v61 = vsel %vm492_vm8, %v483_v9, %v499_v37 }
  0x7b   :  { %v494_v52 = vsel %vm490_vm5, %v474_v49, %v477_v30  ;;  %v496_v5 = vsel %vm492_vm8, %v480_v35, %v495_v51  ;;  %v501_v11 = vsel %vm491_vm7, %v498_v53, %v500_v61  ;;  %v502_v15 = vsel %vm490_vm5, %v480_v35, %v483_v9 }
  0x7c   :  { %v228_v2 = vor.u32 4788187, %v227_v17  ;;  %v411_v38 = vadd.s32 %v1398_v33, %v1395_v26  ;;  %v1068_v4 = vadd.s32 4294967294, %v423_v8  ;;  %v503_v6 = vsel %vm493_vm6, %v489_v50, 1326507024 }
  0x7d   :  { %v327_v12 = vor.u32 %v326_v56, %v325_v54  ;;  %v504_v20 = vsel %vm492_vm8, %v486_v32, %v503_v6  ;;  %v1447_v21 = vmul.u32.u64.low %v506_v16, %v501_v11  ;;  %v1448_v23 = vmul.u32.u64.high %v506_v16, %v501_v11, %v1447_v21 }
  0x7e   :  { %v331_v24 = vor.u32 4788187, %v330_v44  ;;  %vm1069_vm9 = vcmp.lt.s32.totalorder %v1068_v4, 0  ;;  %v497_v59 = vsel %vm491_vm7, %v494_v52, %v496_v5  ;;  %v505_v57 = vsel %vm491_vm7, %v502_v15, %v504_v20 }
  0x7f   :  { %v106_v7 = vmul.f32 0.6931472, %v1116_v43  ;;  %v426_v14 = vsel %vm1069_vm9, 0, %v1068_v4  ;;  %v1453_v25 = vmul.u32.u64.low %v506_v16, %v505_v57  ;;  %v1454_v26 = vmul.u32.u64.high %v506_v16, %v505_v57, %v1453_v25 }
  0x80   :  { %v229_v33 = vand.u32 2147483647, %v228_v2  ;;  %v231_v27 = vcvt.s32.f32 %v224_v60  ;;  %v427_v10 = vsub.s32 32, %v426_v14  ;;  %v431_v29 = vsub.s32 4294967266, %v426_v14 }
  0x81   :  { %v108_v30 = vmul.f32 0.6931472, %v1118_v46  ;;  %v428_v32 = vshll.u32 %v1427_v34, %v426_v14  ;;  %v513_v35 = vmul.u32 %v506_v16, %v497_v59  ;;  %v516_v36 = vadd.s32 1, %v1448_v23 }
  0x82   :  { %v332_v39 = vand.u32 2147483647, %v331_v24  ;;  %v334_v40 = vcvt.s32.f32 %v327_v12  ;;  %v429_v41 = vshrl.u32 %v411_v38, %v427_v10  ;;  %v432_v63 = vadd.s32 127, %v431_v29 }
  0x83   :  { %v1122_v17 = vpop.eup %1121  ;;  %v1458_v43 = vmul.f32 -2.0, %v106_v7  ;;  %vm515_vm10 = vc.u32 %v1454_v26, %v1447_v21  ;;  %v110_v45 = vmul.f32 0.6931472, %v1120_v28  ;;  %v232_v19 = vmul.f32 %v231_v27, %v229_v33 }
  0x84   :  { %v433_v9 = vshll.u32 %v432_v63, 23  ;;  %v517_v46 = vsel %vm515_vm10, %v516_v36, %v1448_v23  ;;  %v1463_v49 = vmul.f32 -2.0, %v108_v30  ;;  %v430_v34 = vor.u32 %v429_v41, %v428_v32 }
  0x85   :  { %v518_v37 = vadd.s32 %v517_v46, %v513_v35  ;;  %v335_v31 = vmul.f32 %v334_v40, %v332_v39  ;;  %1123 = vrsqrt.f32 %v1458_v43  ;;  %v112_v53 = vmul.f32 0.6931472, %v1122_v17 }
  0x86   :  { %v434_v50 = vor.u32 4788187, %v433_v9  ;;  %v1466_v54 = vmul.f32 -2.0, %v110_v45  ;;  %vm151_vm11 = vcmp.lt.s32.totalorder %v1245_v48, 0  ;;  %v233_v56 = vxor.u32 2147483648, %v232_v19 }
  0x87   :  { %v519_v51 = vadd.s32 536870912, %v518_v37  ;;  %1125 = vrsqrt.f32 %v1463_v49  ;;  %v437_v16 = vcvt.s32.f32 %v430_v34  ;;  %v336_v44 = vxor.u32 2147483648, %v335_v31 }
  0x88   :  { %v435_v28 = vand.u32 2147483647, %v434_v50  ;;  %vm254_vm12 = vcmp.lt.s32.totalorder %v1249_v55, 0  ;;  %v1474_v61 = vmul.f32 -2.0, %v112_v53  ;;  %vm1478_vm13 = vcmp.le.f32.partialorder %v149_v58, 0.7853982 }
  0x89   :  { %v1470_v60 = vshrl.u32 %v519_v51, 30  ;;  %v234_v5 = vsel %vm151_vm11, %v233_v56, %v232_v19  ;;  %1127 = vrsqrt.f32 %v1466_v54  ;;  %v235_v2 = vsub.s32 4, %v1310_v42 }
  0x8a   :  { %v438_v11 = vmul.f32 %v437_v16, %v435_v28  ;;  %vm1490_vm14 = vcmp.le.f32.partialorder %v252_v22, 0.7853982  ;;  %v337_v58 = vsel %vm254_vm12, %v336_v44, %v335_v31  ;;  %v237_v4 = vsel %vm1478_vm13, %v1245_v48, %v234_v5 }
  0x8b   :  { %v521_v8 = vshll.u32 %v1470_v60, 30  ;;  %1129 = vrsqrt.f32 %v1474_v61  ;;  %v340_v20 = vsel %vm1490_vm14, %v1249_v55, %v337_v58  ;;  %v236_v24 = vsel %vm151_vm11, %v235_v2, %v1310_v42 }
  0x8c   :  { %v439_v22 = vxor.u32 2147483648, %v438_v11  ;;  %1131 = vcosq.f32 %v237_v4  ;;  %vm1510_vm15 = vcmp.le.f32.partialorder %v355_v0, 0.7853982  ;;  %vm357_vm0 = vcmp.lt.s32.totalorder %v1255_v3, 0 }
  0x8d   :  { %v1485_v15 = vsub.s32 %v518_v37, %v521_v8  ;;  %vm119_vm1 = vcmp.eq.f32.partialorder %v1458_v43, inf  ;;  %1133 = vsinq.f32 %v237_v4  ;;  %v338_v7 = vsub.s32 4, %v1360_v47 }
  0x8e   :  { %vm121_vm2 = vcmp.eq.f32.partialorder %v1458_v43, 0.0  ;;  %v122_v42 = vand.u32 2147483648, %v1458_v43  ;;  %1135 = vcosq.f32 %v340_v20  ;;  %v238_v0 = vsel %vm1478_vm13, 0, %v236_v24 }
  0x8f   :  { %v524_v6 = vsub.s32 0, %v1485_v15  ;;  %v1124_v12 = vpop.eup %1123  ;;  %1137 = vsinq.f32 %v340_v20  ;;  %v440_v33 = vsel %vm357_vm0, %v439_v22, %v438_v11  ;;  %vm126_vm3 = vcmp.eq.f32.partialorder %v1463_v49, inf }
  0x90   :  { %v118_v25 = vmul.f32 %v1124_v12, %v1458_v43  ;;  %vm128_vm4 = vcmp.eq.f32.partialorder %v1463_v49, 0.0  ;;  %v129_v29 = vand.u32 2147483648, %v1463_v49  ;;  %v339_v32 = vsel %vm254_vm12, %v338_v7, %v1360_v47 }
  0x91   :  { %v1071_v23 = vmin.u32 %v524_v6, %v1485_v15  ;;  %v1126_v57 = vpop.eup %1125  ;;  %v441_v35 = vsub.s32 4, %v1415_v18  ;;  %v514_v36 = vadd.s32 %v1447_v21, %v1454_v26  ;;  %v136_v39 = vand.u32 2147483648, %v1466_v54 }
  0x92   :  { %v125_v10 = vmul.f32 %v1126_v57, %v1463_v49  ;;  %v443_v40 = vsel %vm1510_vm15, %v1255_v3, %v440_v33  ;;  %v658_v63 = vadd.s32 3, %v238_v0  ;;  %v120_v17 = vsel %vm119_vm1, %v1458_v43, %v118_v25 }
  0x93   :  { %v526_v14 = vclz %v1071_v23  ;;  %v1128_v30 = vpop.eup %1127  ;;  %v1548_v46 = vand.u32 3, %v238_v0  ;;  %v341_v34 = vsel %vm1490_vm14, 0, %v339_v32  ;;  %v442_v37 = vsel %vm357_vm0, %v441_v35, %v1415_v18 }
  0x94   :  { %v127_v21 = vsel %vm126_vm3, %v1463_v49, %v125_v10  ;;  %v1546_v26 = vmul.f32 %v1128_v30, %v1466_v54  ;;  %1139 = vcosq.f32 %v443_v40  ;;  %v1557_v53 = vsel %vm121_vm2, %v122_v42, %v120_v17 }
  0x95   :  { %v1072_v27 = vadd.s32 4294967294, %v526_v14  ;;  %v1130_v9 = vpop.eup %1129  ;;  %v1559_v56 = vand.u32 3, %v341_v34  ;;  %1141 = vsinq.f32 %v443_v40  ;;  %vm460_vm6 = vcmp.lt.s32.totalorder %v1335_v13, 0 }
  0x96   :  { %v1132_v51 = vpop.eup %1131  ;;  %v659_v28 = vand.u32 3, %v658_v63  ;;  %v1563_v44 = vmul.f32 %v1130_v9, %v1474_v61  ;;  %vm1567_vm7 = vcmp.le.f32.partialorder %v458_v62, 0.7853982  ;;  %v762_v52 = vadd.s32 3, %v341_v34 }
  0x97   :  { %vm1073_vm5 = vcmp.lt.s32.totalorder %v1072_v27, 0  ;;  %v1134_v16 = vpop.eup %1133  ;;  %v1573_v11 = vsel %vm128_vm4, %v129_v29, %v127_v21  ;;  %vm243_vm8 = vcmp.lt.s32.totalorder %v1548_v46, 2  ;;  %vm244_vm9 = vcmp.eq.s32.totalorder %v1548_v46, 0 }
  0x98   :  { %v529_v41 = vsel %vm1073_vm5, 0, %v1072_v27  ;;  %v1136_v5 = vpop.eup %1135  ;;  %vm241_vm10 = vweird.f32 %v1245_v48  ;;  %vm247_vm11 = vcmp.eq.s32.totalorder %v1548_v46, 2  ;;  %v245_v4 = vxor.u32 2147483648, %v1134_v16 }
  0x99   :  { %v530_v45 = vsub.s32 32, %v529_v41  ;;  %v531_v47 = vshll.u32 %v1485_v15, %v529_v41  ;;  %v534_v19 = vsub.s32 4294967266, %v529_v41  ;;  %v444_v15 = vsel %vm1510_vm15, 0, %v442_v37  ;;  %v1138_v2 = vpop.eup %1137 }
  0x9a   :  { %v1581_v62 = vand.u32 3, %v444_v15  ;;  %v248_v49 = vxor.u32 2147483648, %v1132_v51  ;;  %vm346_vm12 = vcmp.lt.s32.totalorder %v1559_v56, 2  ;;  %vm661_vm13 = vcmp.eq.s32.totalorder %v659_v28, 0 }
  0x9b   :  { %v532_v31 = vshrl.u32 %v514_v36, %v530_v45  ;;  %v535_v50 = vadd.s32 127, %v534_v19  ;;  %v544_v12 = vsub.s32 4, %v1470_v60  ;;  %vm664_vm15 = vcmp.eq.s32.totalorder %v659_v28, 2 }
  0x9c   :  { %v763_v20 = vand.u32 3, %v762_v52  ;;  %vm347_vm1 = vcmp.eq.s32.totalorder %v1559_v56, 0  ;;  %v348_v22 = vxor.u32 2147483648, %v1138_v2  ;;  %v351_v23 = vxor.u32 2147483648, %v1136_v5 }
  0x9d   :  { %v533_v8 = vor.u32 %v532_v31, %v531_v47  ;;  %v536_v43 = vshll.u32 %v535_v50, 23  ;;  %v866_v24 = vadd.s32 3, %v444_v15  ;;  %vm350_vm2 = vcmp.eq.s32.totalorder %v1559_v56, 2 }
  0x9e   :  { %vm660_vm4 = vcmp.lt.s32.totalorder %v659_v28, 2  ;;  %v246_v57 = vsel %vm244_vm9, %v1132_v51, %v245_v4  ;;  %v249_v7 = vsel %vm247_vm11, %v248_v49, %v1134_v16  ;;  %v663_v14 = vsel %vm661_vm13, %v1132_v51, %v245_v4  ;;  %v1140_v42 = vpop.eup %1139 }
  0x9f   :  { %v537_v38 = vor.u32 4788187, %v536_v43  ;;  %v540_v58 = vcvt.s32.f32 %v533_v8  ;;  %v666_v25 = vsel %vm664_vm15, %v248_v49, %v1134_v16  ;;  %v545_v33 = vsel %vm460_vm6, %v544_v12, %v1470_v60  ;;  %v1142_v27 = vpop.eup %1141 }
  0xa0   :  { %vm765_vm5 = vcmp.eq.s32.totalorder %v763_v20, 0  ;;  %vm768_vm0 = vcmp.eq.s32.totalorder %v763_v20, 2  ;;  %vm135_vm3 = vcmp.eq.f32.partialorder %v1466_v54, 0.0  ;;  %vm140_vm14 = vcmp.eq.f32.partialorder %v1474_v61, inf }
  0xa1   :  { %v538_v6 = vand.u32 2147483647, %v537_v38  ;;  %v349_v10 = vsel %vm347_vm1, %v1136_v5, %v348_v22  ;;  %v352_v29 = vsel %vm350_vm2, %v351_v23, %v1138_v2  ;;  %vm453_vm9 = vcmp.eq.s32.totalorder %v1581_v62, 2 }
  0xa2   :  { %v867_v30 = vand.u32 3, %v866_v24  ;;  %v250_v32 = vsel %vm243_vm8, %v246_v57, %v249_v7  ;;  %v667_v35 = vsel %vm660_vm4, %v663_v14, %v666_v25  ;;  %vm764_vm11 = vcmp.lt.s32.totalorder %v763_v20, 2 }
  0xa3   :  { %v541_v59 = vmul.f32 %v540_v58, %v538_v6  ;;  %v547_v40 = vsel %vm1567_vm7, 0, %v545_v33  ;;  %v767_v41 = vsel %vm765_vm5, %v1136_v5, %v348_v22  ;;  %v770_v63 = vsel %vm768_vm0, %v351_v23, %v1138_v2 }
  0xa4   :  { %v353_v17 = vsel %vm346_vm12, %v349_v10, %v352_v29  ;;  %v451_v45 = vxor.u32 2147483648, %v1142_v27  ;;  %v454_v47 = vxor.u32 2147483648, %v1140_v42  ;;  %v251_v19 = vsel %vm241_vm10, nan, %v250_v32 }
  0xa5   :  { %v542_v0 = vxor.u32 2147483648, %v541_v59  ;;  %vm872_vm8 = vcmp.eq.s32.totalorder %v867_v30, 2  ;;  %v668_v9 = vsel %vm241_vm10, nan, %v667_v35  ;;  %v771_v21 = vsel %vm764_vm11, %v767_v41, %v770_v63 }
  0xa6   :  { %v970_v46 = vadd.s32 3, %v547_v40  ;;  %vm1686_vm12 = vweird.f32 %v1249_v55  ;;  %vm449_vm13 = vcmp.lt.s32.totalorder %v1581_v62, 2  ;;  %vm868_vm0 = vcmp.lt.s32.totalorder %v867_v30, 2 }
  0xa7   :  { %v543_v60 = vsel %vm460_vm6, %v542_v0, %v541_v59  ;;  %vm869_vm6 = vcmp.eq.s32.totalorder %v867_v30, 0  ;;  %v354_v37 = vsel %vm1686_vm12, nan, %v353_v17  ;;  %vm1687_vm15 = vcmp.eq.s32.totalorder %v1581_v62, 0  ;;  %vm1688_vm10 = vmmov %vm1686_vm12 }
  0xa8   :  { %v546_v36 = vsel %vm1567_vm7, %v1335_v13, %v543_v60  ;;  %vm1685_vm7 = vcmp.eq.f32.partialorder %v1466_v54, inf  ;;  %v452_v31 = vsel %vm1687_vm15, %v1140_v42, %v451_v45  ;;  %v455_v48 = vsel %vm453_vm9, %v454_v47, %v1142_v27 }
  0xa9   :  { %1143 = vcosq.f32 %v546_v36  ;;  %v134_v34 = vsel %vm1685_vm7, %v1466_v54, %v1546_v26  ;;  %v871_v50 = vsel %vm869_vm6, %v1140_v42, %v451_v45  ;;  %v874_v51 = vsel %vm872_vm8, %v454_v47, %v1142_v27  ;;  %v985_v45 = vld [vmem:[#allocation4] sm:$0xff]  ;;  %v986_v47 = vld [vmem:[#allocation4 + $0x8] sm:$0xff] }
  0xaa   :  { %1145 = vsinq.f32 %v546_v36  ;;  %v561_v56 = vmul.f32 %v251_v19, %v1557_v53  ;;  %v772_v28 = vsel %vm1688_vm10, nan, %v771_v21  ;;  %v981_v26 = vmul.f32 %v668_v9, %v1557_v53 }
  0xab   :  { %v1202_v16 = vmov 1983009808   ;;  %vm447_vm1 = vweird.f32 %v1255_v3  ;;  %v551_v8 = vand.u32 3, %v547_v40  ;;  %v971_v43 = vand.u32 3, %v970_v46 }
  0xac   :  { %v1006_v18 = vunpack.c.l.s4 %v1202_v16  ;;  %vm142_vm2 = vcmp.eq.f32.partialorder %v1474_v61, 0.0  ;;  %v456_v52 = vsel %vm449_vm13, %v452_v31, %v455_v48  ;;  %v562_v5 = vmul.f32 %v354_v37, %v1573_v11 }
  0xad   :  { %v875_v15 = vsel %vm868_vm0, %v871_v50, %v874_v51  ;;  %v137_v55 = vsel %vm135_vm3, %v136_v39, %v134_v34  ;;  %v141_v53 = vsel %vm140_vm14, %v1474_v61, %v1563_v44  ;;  %v143_v2 = vand.u32 2147483648, %v1474_v61 }
  0xae   :  { %v982_v62 = vmul.f32 %v772_v28, %v1573_v11  ;;  %vm550_vm4 = vweird.f32 %v1335_v13  ;;  %v987_v38 = vmul.f32 0.2, %v561_v56  ;;  %v991_v58 = vmul.f32 0.2, %v981_v26 }
  0xaf   :  { %v1007_v4 = vunpack.c.0.s8 %v1006_v18  ;;  %v457_v6 = vsel %vm447_vm1, nan, %v456_v52  ;;  %vm556_vm5 = vcmp.eq.s32.totalorder %v551_v8, 2  ;;  %v876_v54 = vsel %vm447_vm1, nan, %v875_v15 }
  0xb0   :  { %vm976_vm3 = vcmp.eq.s32.totalorder %v971_v43, 2  ;;  %vm553_vm14 = vcmp.eq.s32.totalorder %v551_v8, 0  ;;  %vm973_vm9 = vcmp.eq.s32.totalorder %v971_v43, 0  ;;  %v988_v12 = vmul.f32 0.2, %v562_v5 }
  0xb1   :  { %vm552_vm11 = vcmp.lt.s32.totalorder %v551_v8, 2  ;;  %vm972_vm6 = vcmp.lt.s32.totalorder %v971_v43, 2  ;;  %v992_v20 = vmul.f32 0.2, %v982_v62  ;;  %v563_v23 = vmul.f32 %v457_v6, %v137_v55 }
  0xb2   :  { %v983_v59 = vmul.f32 %v876_v54, %v137_v55  ;;  %v144_v57 = vsel %vm142_vm2, %v143_v2, %v141_v53  ;;  %v1010_v42 = vsub.s32 %v1007_v4, %v1234_v1  ;;  %v1003_v27 = vcombine.low %v987_v38, %v988_v12 }
  0xb3   :  { %v1144_v49 = vpop.eup %1143  ;;  %v1020_v10 = vcombine.low %v991_v58, %v992_v20  ;;  %v989_v32 = vmul.f32 0.2, %v563_v23 }
  0xb4   :  { %v1146_v39 = vpop.eup %1145  ;;  %v557_v44 = vxor.u32 2147483648, %v1144_v49  ;;  %v993_v60 = vmul.f32 0.2, %v983_v59  ;;  %v1011_v40 = vrot.slane %v1003_v27, %v1010_v42 }
  0xb5   :  { %v554_v11 = vxor.u32 2147483648, %v1146_v39  ;;  %v1028_v63 = vrot.slane %v1020_v10, %v1010_v42 }
  0xb6   :  { %v558_v22 = vsel %vm556_vm5, %v557_v44, %v1146_v39  ;;  %v978_v24 = vsel %vm976_vm3, %v557_v44, %v1146_v39 }
  0xb7   :  { %v555_v7 = vsel %vm553_vm14, %v1144_v49, %v554_v11  ;;  %v975_v3 = vsel %vm973_vm9, %v1144_v49, %v554_v11 }
  0xb8   :  { %v559_v14 = vsel %vm552_vm11, %v555_v7, %v558_v22  ;;  %v979_v25 = vsel %vm972_vm6, %v975_v3, %v978_v24 }
  0xb9   :  { %v560_v0 = vsel %vm550_vm4, nan, %v559_v14  ;;  %v980_v33 = vsel %vm550_vm4, nan, %v979_v25 }
  0xba   :  { %v564_v29 = vmul.f32 %v560_v0, %v144_v57  ;;  %v984_v30 = vmul.f32 %v980_v33, %v144_v57 }
  0xbc   :  { %v990_v61 = vmul.f32 0.2, %v564_v29  ;;  %v994_v35 = vmul.f32 0.2, %v984_v30 }
  0xbe   :  { %v1004_v36 = vcombine.low %v989_v32, %v990_v61  ;;  %v1021_v41 = vcombine.low %v993_v60, %v994_v35 }
  0xc0   :  { %v1018_v17 = vrot.slane %v1004_v36, %v1010_v42  ;;  %v1035_v1 = vrot.slane %v1021_v41, %v1010_v42 }
  0xc2   :  { %v1019_v13 = vcombine.low %v1011_v40, %v1018_v17  ;;  %v1036_v19 = vcombine.low %v1028_v63, %v1035_v1 }
  0xc4   :  { %v1039_v9 = vadd.f32 %v1019_v13, %v985_v45  ;;  %v1040_v21 = vadd.f32 %v1036_v19, %v986_v47 }
  0xc6   :  { %1041 = vst [vmem:[#allocation7] sm:$0xff] %v1039_v9  ;;  %1042 = vst [vmem:[#allocation7 + $0x8] sm:$0xff] %v1040_v21 }
  0xc7   :  { %1180 = shalt.err (!%p1177_p12)
}
  0xc8   :  { %s1181_s27 = scalar_lea.hbm %s1676_s2, 256 }
  0xc9   :  { %p1182_p13 = scmp.ne.s32.totalorder %s1676_s2, %s1181_s27  ;;  %p1185_p0 = scmp.lt.u32.totalorder %s1181_s27, %s1676_s2 }
  0xcb   :  { %p1187_p1 = pnand %p1185_p0, %p1182_p13 }
  0xcd   :  { %1190 = shalt.err (!%p1187_p1)
}
  0xce   :  { %1052 = dma.vmem_to_hbm [thread:$0]  %s1050_s1, 256, %s1676_s2, [#allocation6]  }
  0xcf   :  { %1193 = dma.done.wait [#allocation6], 256  }
  0xd0   :  { %1194 = vsyncadd [#allocation6], 4294967040 }
  0xd1   :  { %1056 = vsyncpa [#allocation5], 1 }
  0xd2   :  { %1057 = vsyncpa [#allocation6], 1 }

</bundles_post_ra>
